<compile_context>
chip_gen: v7x
topology: tpu7x:2x2x1
jax: 0.10.0
libtpu: 0.0.40
codegen_flags: <defaults>
</compile_context>

<pallas_src>
import jax
import jax.numpy as jnp
from jax.experimental import pallas as pl
from jax.experimental.pallas import tpu as pltpu

_VMEM_LIMIT_BYTES = 48 * 1024 * 1024  # <= v7x per-TC 64 MiB physical; ample on v5e/v6e (128 MiB)
_BLOCK_F32_BUDGET = 8 * 1024 * 1024   # f32 image of one z block (also bounds elementwise temps)
_CHUNK_F32_BUDGET = 4 * 1024 * 1024   # per-chunk f32 temporaries for the huge-D path


def _round_up(x, m):
    return ((x + m - 1) // m) * m


def _make_kernel(r, d_seg, n_chunks, chunk, rem):
    """Build the kernel body.

    r       : original z rows packed into one kernel row (small-D packing; 1 = none)
    d_seg   : original feature dim D (one packed segment)
    n_chunks/chunk/rem : in-kernel feature chunking for huge D (only with r == 1)

    Block shapes seen by the kernel:
      z_ref : (TB, r*D)  native dtype
      c_ref : (1,  r*D)  native dtype (center, tiled r times)
      o_ref : (1, TB) f32 if r == 1, else (TB, r) f32 (tiny output, reshaped outside)
    """
    assert r == 1 or (n_chunks == 1 and rem == 0)

    def kernel(z_ref, c_ref, o_ref):
        tb = z_ref.shape[0]

        if n_chunks == 1 and rem == 0:
            # Whole feature extent in one pass (bounded by the f32-image budget).
            z = z_ref[...].astype(jnp.float32)
            c = c_ref[...].astype(jnp.float32)
            diff = z - c                              # broadcast (1, r*D) over the tile
            sq = diff * diff                          # VPU
            if r == 1:
                d = jnp.sum(sq, axis=1)               # (TB,) XLU lane reduce
                o_ref[...] = d.reshape(1, tb)         # lane-dense (1, TB) store
            else:
                # Segmented reduce: column j = distance of the j-th packed row.
                for j in range(r):
                    seg = sq[:, j * d_seg:(j + 1) * d_seg]
                    o_ref[:, j:j + 1] = jnp.sum(seg, axis=1, keepdims=True)
        else:
            # Huge-D path: the whole native (TB, D) block stays resident (one DMA per
            # grid step), but the f32 upcast / subtract / square / reduce runs over
            # static lane chunks so temporaries stay ~_CHUNK_F32_BUDGET instead of
            # 3x the full f32 block. n_chunks is small (<~6) by construction.
            acc = jnp.zeros((tb,), jnp.float32)
            bounds = [(k * chunk, chunk) for k in range(n_chunks)]
            if rem:
                bounds.append((n_chunks * chunk, rem))
            for start, size in bounds:
                df = (z_ref[:, start:start + size].astype(jnp.float32)
                      - c_ref[:, start:start + size].astype(jnp.float32))
                acc = acc + jnp.sum(df * df, axis=1)
            o_ref[...] = acc.reshape(1, tb)

    return kernel


def center_dist_loss(z, center):
    """Pallas equivalent of torch.sum((z - center) ** 2, dim=1).

    z: (B, D) array; center: (D,) or (1, D) array. Returns (B,) float32.
    """
    B, D = z.shape
    itemsize = z.dtype.itemsize
    c = jnp.reshape(center, (1, D))

    # --- small-D packing: pack r consecutive rows into one kernel row so the
    # (8,128) lane tiles / DMA rows are (nearly) full instead of D/128 occupied.
    r = 1
    if D < 128:
        r = min(128 // D, 16)
        while r > 1 and B % r != 0:
            r -= 1
    feat = r * D
    rows = B // r
    if r > 1:
        z_k = z.reshape(rows, feat)          # free: contiguous row-major regrouping
        c_k = jnp.tile(c, (1, r))
    else:
        z_k, c_k = z, c

    # --- batch tile: as many rows as fit an ~8 MiB f32 image (>=4 MiB native blocks
    # even for bf16 -> ~85%+ of HBM roofline), multiple of 128, and at most ~half the
    # batch so the grid has >=2 steps (pipeline overlap + v7x megacore).
    row_f32 = feat * 4
    tb = max(128, (_BLOCK_F32_BUDGET // row_f32) // 128 * 128)
    tb = min(tb, max(128, _round_up(pl.cdiv(rows, 2), 128)))
    grid = (pl.cdiv(rows, tb),)   # ragged last tile is masked by Pallas: no jnp.pad pre-pass

    # --- huge-D: the 128-row floor can exceed the f32-image budget; chunk the
    # in-kernel reduce so temporaries stay bounded (the native block still fits VMEM).
    n_chunks, chunk, rem = 1, feat, 0
    if r == 1 and tb * row_f32 > _BLOCK_F32_BUDGET:
        chunk = max(128, (_CHUNK_F32_BUDGET // (tb * 4)) // 128 * 128)
        chunk = min(chunk, feat)
        n_chunks = feat // chunk
        rem = feat % chunk
    # TODO(synk): for truly enormous D (128 * D * itemsize * 2 > vmem limit) add a
    # feature grid axis / manual DMA pipeline; not needed for typical feature dims.

    if r == 1:
        out_shape = jax.ShapeDtypeStruct((1, rows), jnp.float32)       # rows == B
        out_spec = pl.BlockSpec((1, tb), lambda i: (0, i))             # lane-dense output
    else:
        out_shape = jax.ShapeDtypeStruct((rows, r), jnp.float32)       # tiny (B*4 B) output
        out_spec = pl.BlockSpec((tb, r), lambda i: (i, 0))

    cost = pl.CostEstimate(
        flops=3 * B * D,
        transcendentals=0,
        bytes_accessed=B * D * itemsize + D * c.dtype.itemsize + B * 4,
    )

    out = pl.pallas_call(
        _make_kernel(r, D, n_chunks, chunk, rem),
        out_shape=out_shape,
        grid_spec=pltpu.PrefetchScalarGridSpec(
            num_scalar_prefetch=0,
            grid=grid,
            in_specs=[
                pl.BlockSpec((tb, feat), lambda i: (i, 0)),   # batch tile of z
                pl.BlockSpec((1, feat), lambda i: (0, 0)),    # center, reused every step
            ],
            out_specs=out_spec,
        ),
        compiler_params=pltpu.CompilerParams(
            dimension_semantics=("parallel",),   # independent batch tiles -> v7x megacore
            vmem_limit_bytes=_VMEM_LIMIT_BYTES,  # double-buffered blocks + f32 temps
        ),
        cost_estimate=cost,
    )(z_k, c_k)
    return jnp.reshape(out, (B,))


if __name__ == "__main__":
    key = jax.random.PRNGKey(0)
    kz, kc = jax.random.split(key)

    # Feature vectors (batch, hidden), as the module's forward implies.
    B, D = 2, 32
    z = jax.random.normal(kz, (B, D), dtype=jnp.float32)
    center = jax.random.normal(kc, (D,), dtype=jnp.float32)

    dist = jax.block_until_ready(center_dist_loss(z, center))
    ref = jnp.sum((z - center[None, :]) ** 2, axis=1)
    assert dist.shape == (B,)
    assert jnp.allclose(dist, ref, rtol=1e-5, atol=1e-5)

    # Exercise the remaining code paths (still small shapes).
    for b, d, dt in [
        (512, 32, jnp.float32),     # packed small-D path (r=4)
        (300, 256, jnp.float32),    # ragged last grid step, no host-side padding
        (16, 20000, jnp.float32),   # huge-D path: in-kernel chunked reduce
        (256, 1024, jnp.bfloat16),  # bf16 inputs, f32 accumulation in-kernel
    ]:
        k1, k2, key = jax.random.split(key, 3)
        zz = jax.random.normal(k1, (b, d), dtype=dt)
        cc = jax.random.normal(k2, (d,), dtype=dt)
        got = jax.block_until_ready(center_dist_loss(zz, cc))
        want = jnp.sum(
            (zz.astype(jnp.float32) - cc.astype(jnp.float32)[None, :]) ** 2, axis=1)
        assert got.shape == (b,)
        assert jnp.allclose(got, want, rtol=1e-3, atol=1e-3), (b, d, dt)

    print("KERNEL_OK")
</pallas_src>

<mosaic_0001>
module attributes {stable_mosaic.version = 11 : i64} {
  func.func @kernel(%arg0: i32, %arg1: memref<128x64xf32, #tpu.memory_space<vmem>>, %arg2: memref<1x64xf32, #tpu.memory_space<vmem>>, %arg3: memref<128x2xf32, #tpu.memory_space<vmem>>) attributes {dimension_semantics = [#tpu.dimension_semantics<parallel>], iteration_bounds = array<i64: 1>, scalar_prefetch = 0 : i64, scratch_operands = 0 : i64, tpu.core_type = #tpu.core_type<tc>, window_params = [{transform_indices = @transform_0, window_bounds = array<i64: 128, 64>}, {pipeline_mode = #tpu.pipeline_mode<synchronous>, transform_indices = @transform_1, window_bounds = array<i64: 1, 64>}, {transform_indices = @transform_2, window_bounds = array<i64: 128, 2>}]} {
    %c0 = arith.constant 0 : index
    %c0_0 = arith.constant 0 : index
    %0 = vector.load %arg1[%c0, %c0_0] : memref<128x64xf32, #tpu.memory_space<vmem>>, vector<128x64xf32>
    %c0_1 = arith.constant 0 : index
    %c0_2 = arith.constant 0 : index
    %1 = vector.load %arg2[%c0_1, %c0_2] : memref<1x64xf32, #tpu.memory_space<vmem>>, vector<1x64xf32>
    %2 = vector.broadcast %1 : vector<1x64xf32> to vector<128x64xf32>
    %3 = arith.subf %0, %2 : vector<128x64xf32>
    %4 = arith.mulf %3, %3 : vector<128x64xf32>
    %5 = vector.extract_strided_slice %4 {offsets = [0, 0], sizes = [128, 32], strides = [1, 1]} : vector<128x64xf32> to vector<128x32xf32>
    %cst = arith.constant dense<0.000000e+00> : vector<128xf32>
    %6 = vector.multi_reduction <add>, %5, %cst [1] : vector<128x32xf32> to vector<128xf32>
    %7 = vector.shape_cast %6 : vector<128xf32> to vector<128x1xf32>
    %c0_3 = arith.constant 0 : index
    %c0_4 = arith.constant 0 : index
    %8 = vector.load %arg3[%c0_3, %c0_4] : memref<128x2xf32, #tpu.memory_space<vmem>>, vector<128x1xf32>
    tpu.vector_store %arg3[%c0_3, %c0_4], %7 {strides = array<i32>} : memref<128x2xf32, #tpu.memory_space<vmem>>, vector<128x1xf32>,
    %9 = vector.extract_strided_slice %4 {offsets = [0, 32], sizes = [128, 32], strides = [1, 1]} : vector<128x64xf32> to vector<128x32xf32>
    %cst_5 = arith.constant dense<0.000000e+00> : vector<128xf32>
    %10 = vector.multi_reduction <add>, %9, %cst_5 [1] : vector<128x32xf32> to vector<128xf32>
    %11 = vector.shape_cast %10 : vector<128xf32> to vector<128x1xf32>
    %c0_6 = arith.constant 0 : index
    %c1 = arith.constant 1 : index
    %12 = vector.load %arg3[%c0_6, %c1] : memref<128x2xf32, #tpu.memory_space<vmem>>, vector<128x1xf32>
    tpu.vector_store %arg3[%c0_6, %c1], %11 {strides = array<i32>} : memref<128x2xf32, #tpu.memory_space<vmem>>, vector<128x1xf32>,
    return
  }
  func.func @transform_0(%arg0: i32) -> (i32, i32) {
    %c0_i32 = arith.constant 0 : i32
    %c0_i32_0 = arith.constant 0 : i32
    return %arg0, %c0_i32 : i32, i32
  }
  func.func @transform_1(%arg0: i32) -> (i32, i32) {
    %c0_i32 = arith.constant 0 : i32
    %c0_i32_0 = arith.constant 0 : i32
    %c0_i32_1 = arith.constant 0 : i32
    return %c0_i32, %c0_i32_0 : i32, i32
  }
  func.func @transform_2(%arg0: i32) -> (i32, i32) {
    %c0_i32 = arith.constant 0 : i32
    %c0_i32_0 = arith.constant 0 : i32
    return %arg0, %c0_i32 : i32, i32
  }
}

</mosaic_0001>

<bundles_post_ra>
// kernel: tpu_custom_call.1
= control target key start
LH: loop header
LB: loop body
LE: loop exit
PB: predicated region body
PF: predicated region fallthrough
CT: control target
= control target key end

     0   :  { %7 = vsyncpa [#allocation3], 0  ;;  %s480_s0 = inlined_call_operand.hbm [shape: f32[1,64], index: 0, kind: input, shape index: {}]   ;;  %s481_s1 = inlined_call_operand.vmem [shape: f32[1,64], index: 1, kind: input, shape index: {}]   ;;  %s482_s2 = inlined_call_operand.hbm [shape: f32[1,2], index: 2, kind: output, shape index: {}]  }
   0x1   :  { %8 = vsyncpa [#allocation4], 0 }
   0x2   :  { %13 = vsyncadd [#allocation3], 2032  ;;  %s347_s9 = smov [#allocation2]   ;;  %s299_s13 = scalar_lea.hbm %s480_s0, 16 }
   0x3   :  { %s14_s10 = sshll.u32 %s347_s9, 4  ;;  %p300_p0 = scmp.ne.s32.totalorder %s480_s0, %s299_s13  ;;  %s15_s10 = int_to_ptr.vmem [resolvable:$true] %s14_s10 }
   0x4   :  { %p303_p1 = scmp.lt.u32.totalorder %s299_s13, %s480_s0 }
   0x6   :  { %p305_p2 = pnand %p303_p1, %p300_p0 }
   0x8   :  { %308 = shalt.err (!%p305_p2)
}
   0x9   :  { %s309_s18 = scalar_lea.vmem %s15_s10, 16  ;;  %s313_s19 = scalar_lea.vmem %s15_s10, 2048 }
   0xa   :  { %p310_p3 = scmp.ne.s32.totalorder %s15_s10, %s309_s18  ;;  %p314_p4 = scmp.lt.s32.totalorder %s15_s10, %s15_s10 }
   0xb   :  { %p315_p5 = scmp.lt.s32.totalorder %s313_s19, %s309_s18 }
   0xd   :  { %p316_p6 = por %p315_p5, %p314_p4 }
   0xf   :  { %p317_p7 = pnand %p316_p6, %p310_p3 }
  0x11   :  { %320 = shalt.err (!%p317_p7)
}
  0x12   :  { %s348_s20 = smov 16   ;;  %s349_s21 = smov 1  }
  0x13   :  { %20 = dma.hbm_to_vmem [thread:$0]  %s480_s0, 16, %s15_s10, [#allocation3], %s348_s20, %s348_s20, %s349_s21  }
  0x14   :  { %343 = dma.done.wait [#allocation3], 2048  }
  0x15   :  { %344 = vsyncadd [#allocation3], 4294965248  ;;  %v26_v0 = vld [vmem:[#allocation2] sm:$0xff]  ;;  %v28_v2 = vld [vmem:[#allocation2 + $0x10] sm:$0xff]  ;;  %s350_s0 = smov 96   ;;  %vm81_vm0 = vcmask 261120  }
  0x16   :  { %v293_v1 = vld [vmem:[%s481_s1] ss:$0 sm:$0xff]  ;;  %v27_v5 = vld [vmem:[#allocation2 + $0x8] sm:$0xff]  ;;  %v29_v6 = vld [vmem:[#allocation2 + $0x18] sm:$0xff]  ;;  %vm130_vm1 = vcmask 7168   ;;  %vm259_vm2 = vcmask 15368  }
  0x17   :  { %v49_v3 = vsub.f32 %v26_v0, %v293_v1  ;;  %v51_v4 = vsub.f32 %v28_v2, %v293_v1  ;;  %v31_v7 = vld [vmem:[#allocation2 + $0x28] sm:$0xff]  ;;  %v50_v8 = vsub.f32 %v27_v5, %v293_v1  ;;  %v52_v9 = vsub.f32 %v29_v6, %v293_v1  ;;  %v30_v10 = vld [vmem:[#allocation2 + $0x20] sm:$0xff]  ;;  %v33_v17 = vld [vmem:[#allocation2 + $0x38] sm:$0xff] }
  0x18   :  { %v54_v13 = vsub.f32 %v31_v7, %v293_v1  ;;  %v53_v16 = vsub.f32 %v30_v10, %v293_v1  ;;  %v32_v18 = vld [vmem:[#allocation2 + $0x30] sm:$0xff]  ;;  %v56_v19 = vsub.f32 %v33_v17, %v293_v1  ;;  %v35_v23 = vld [vmem:[#allocation2 + $0x48] sm:$0xff]  ;;  %v34_v24 = vld [vmem:[#allocation2 + $0x40] sm:$0xff] }
  0x19   :  { %v65_v11 = vmul.f32 %v49_v3, %v49_v3  ;;  %v67_v12 = vmul.f32 %v51_v4, %v51_v4  ;;  %v66_v14 = vmul.f32 %v50_v8, %v50_v8  ;;  %v68_v15 = vmul.f32 %v52_v9, %v52_v9  ;;  %v37_v29 = vld [vmem:[#allocation2 + $0x58] sm:$0xff]  ;;  %v36_v30 = vld [vmem:[#allocation2 + $0x50] sm:$0xff]  ;;  %v39_v35 = vld [vmem:[#allocation2 + $0x68] sm:$0xff] }
  0x1a   :  { %v70_v20 = vmul.f32 %v54_v13, %v54_v13  ;;  %v69_v21 = vmul.f32 %v53_v16, %v53_v16  ;;  %v55_v22 = vsub.f32 %v32_v18, %v293_v1  ;;  %v72_v25 = vmul.f32 %v56_v19, %v56_v19  ;;  %v38_v36 = vld [vmem:[#allocation2 + $0x60] sm:$0xff]  ;;  %v41_v41 = vld [vmem:[#allocation2 + $0x78] sm:$0xff]  ;;  %v40_v42 = vld [vmem:[#allocation2 + $0x70] sm:$0xff] }
  0x1b   :  { %163 = vrot.lane.b32.xlu0 %v65_v11, %s350_s0  ;;  %167 = vrot.lane.b32.xlu1 %v67_v12, %s350_s0  ;;  %v58_v27 = vsub.f32 %v35_v23, %v293_v1  ;;  %v57_v28 = vsub.f32 %v34_v24, %v293_v1  ;;  %v60_v31 = vsub.f32 %v37_v29, %v293_v1  ;;  %v82_v49 = vsel %vm81_vm0, %v65_v11, 0.0 }
  0x1c   :  { %v71_v26 = vmul.f32 %v55_v22, %v55_v22  ;;  %v59_v34 = vsub.f32 %v36_v30, %v293_v1  ;;  %v62_v37 = vsub.f32 %v39_v35, %v293_v1  ;;  %v61_v40 = vsub.f32 %v38_v36, %v293_v1 }
  0x1d   :  { %v74_v32 = vmul.f32 %v58_v27, %v58_v27  ;;  %v73_v33 = vmul.f32 %v57_v28, %v57_v28  ;;  %v76_v38 = vmul.f32 %v60_v31, %v60_v31  ;;  %v64_v43 = vsub.f32 %v41_v41, %v293_v1 }
  0x1e   :  { %v75_v39 = vmul.f32 %v59_v34, %v59_v34  ;;  %v78_v44 = vmul.f32 %v62_v37, %v62_v37  ;;  %v77_v45 = vmul.f32 %v61_v40, %v61_v40  ;;  %v63_v46 = vsub.f32 %v40_v42, %v293_v1 }
  0x1f   :  { %165 = vrot.lane.b32.xlu0 %v66_v14, %s350_s0  ;;  %169 = vrot.lane.b32.xlu1 %v68_v15, %s350_s0  ;;  %v80_v47 = vmul.f32 %v64_v43, %v64_v43  ;;  %v88_v50 = vsel %vm81_vm0, %v67_v12, 0.0  ;;  %v85_v51 = vsel %vm81_vm0, %v66_v14, 0.0  ;;  %v91_v52 = vsel %vm81_vm0, %v68_v15, 0.0 }
  0x20   :  { %v79_v48 = vmul.f32 %v63_v46, %v63_v46  ;;  %v94_v53 = vsel %vm81_vm0, %v69_v21, 0.0  ;;  %v97_v54 = vsel %vm81_vm0, %v70_v20, 0.0  ;;  %v100_v55 = vsel %vm81_vm0, %v71_v26, 0.0 }
  0x21   :  { %v103_v56 = vsel %vm81_vm0, %v72_v25, 0.0  ;;  %v106_v57 = vsel %vm81_vm0, %v73_v33, 0.0  ;;  %v109_v58 = vsel %vm81_vm0, %v74_v32, 0.0  ;;  %v112_v59 = vsel %vm81_vm0, %v75_v39, 0.0 }
  0x22   :  { %v115_v60 = vsel %vm81_vm0, %v76_v38, 0.0  ;;  %v118_v61 = vsel %vm81_vm0, %v77_v45, 0.0  ;;  %v121_v62 = vsel %vm81_vm0, %v78_v44, 0.0  ;;  %v124_v63 = vsel %vm81_vm0, %v79_v48, 0.0 }
  0x23   :  { %173 = vrot.lane.b32.xlu1 %v70_v20, %s350_s0  ;;  %171 = vrot.lane.b32.xlu0 %v69_v21, %s350_s0  ;;  %v127_v0 = vsel %vm81_vm0, %v80_v47, 0.0 }
  0x27   :  { %177 = vrot.lane.b32.xlu1 %v72_v25, %s350_s0  ;;  %175 = vrot.lane.b32.xlu0 %v71_v26, %s350_s0 }
  0x2b   :  { %181 = vrot.lane.b32.xlu1 %v74_v32, %s350_s0  ;;  %179 = vrot.lane.b32.xlu0 %v73_v33, %s350_s0 }
  0x2f   :  { %185 = vrot.lane.b32.xlu1 %v76_v38, %s350_s0  ;;  %183 = vrot.lane.b32.xlu0 %v75_v39, %s350_s0 }
  0x33   :  { %189 = vrot.lane.b32.xlu1 %v78_v44, %s350_s0  ;;  %187 = vrot.lane.b32.xlu0 %v77_v45, %s350_s0 }
  0x37   :  { %193 = vrot.lane.b32.xlu1 %v80_v47, %s350_s0  ;;  %191 = vrot.lane.b32.xlu0 %v79_v48, %s350_s0 }
  0x56   :  { %83 = vadd.xlane.f32.xlu0 %v82_v49 }
  0x5a   :  { %89 = vadd.xlane.f32.xlu0 %v88_v50 }
  0x5b   :  { %86 = vadd.xlane.f32.xlu1 %v85_v51 }
  0x5e   :  { %92 = vadd.xlane.f32.xlu0 %v91_v52 }
  0x5f   :  { %95 = vadd.xlane.f32.xlu1 %v94_v53 }
  0x62   :  { %98 = vadd.xlane.f32.xlu0 %v97_v54 }
  0x63   :  { %101 = vadd.xlane.f32.xlu1 %v100_v55 }
  0x66   :  { %104 = vadd.xlane.f32.xlu0 %v103_v56 }
  0x67   :  { %107 = vadd.xlane.f32.xlu1 %v106_v57 }
  0x6a   :  { %110 = vadd.xlane.f32.xlu0 %v109_v58 }
  0x6b   :  { %113 = vadd.xlane.f32.xlu1 %v112_v59 }
  0x6e   :  { %116 = vadd.xlane.f32.xlu0 %v115_v60 }
  0x6f   :  { %119 = vadd.xlane.f32.xlu1 %v118_v61 }
  0x72   :  { %122 = vadd.xlane.f32.xlu0 %v121_v62 }
  0x73   :  { %125 = vadd.xlane.f32.xlu1 %v124_v63 }
  0x76   :  { %128 = vadd.xlane.f32.xlu0 %v127_v0 }
  0x8d   :  { %v164_v1 = vpop.permute.xlu0 %163  ;;  %v168_v2 = vpop.permute.xlu1 %167 }
  0x8e   :  { %v211_v3 = vsel %vm81_vm0, %v164_v1, 0.0  ;;  %v217_v4 = vsel %vm81_vm0, %v168_v2, 0.0 }
  0x8f   :  { %212 = vadd.xlane.f32.xlu1 %v211_v3 }
  0x91   :  { %v166_v5 = vpop.permute.xlu0 %165  ;;  %v170_v6 = vpop.permute.xlu1 %169 }
  0x92   :  { %v214_v7 = vsel %vm81_vm0, %v166_v5, 0.0  ;;  %v220_v8 = vsel %vm81_vm0, %v170_v6, 0.0 }
  0x93   :  { %218 = vadd.xlane.f32.xlu1 %v217_v4  ;;  %215 = vadd.xlane.f32.xlu0 %v214_v7 }
  0x95   :  { %v174_v9 = vpop.permute.xlu1 %173  ;;  %v172_v10 = vpop.permute.xlu0 %171 }
  0x96   :  { %v223_v11 = vsel %vm81_vm0, %v172_v10, 0.0  ;;  %v226_v12 = vsel %vm81_vm0, %v174_v9, 0.0 }
  0x97   :  { %221 = vadd.xlane.f32.xlu0 %v220_v8  ;;  %224 = vadd.xlane.f32.xlu1 %v223_v11 }
  0x99   :  { %v178_v13 = vpop.permute.xlu1 %177  ;;  %v176_v14 = vpop.permute.xlu0 %175 }
  0x9a   :  { %v229_v15 = vsel %vm81_vm0, %v176_v14, 0.0  ;;  %v232_v16 = vsel %vm81_vm0, %v178_v13, 0.0 }
  0x9b   :  { %227 = vadd.xlane.f32.xlu0 %v226_v12  ;;  %230 = vadd.xlane.f32.xlu1 %v229_v15 }
  0x9d   :  { %v182_v17 = vpop.permute.xlu1 %181  ;;  %v180_v18 = vpop.permute.xlu0 %179 }
  0x9e   :  { %v235_v19 = vsel %vm81_vm0, %v180_v18, 0.0  ;;  %v238_v20 = vsel %vm81_vm0, %v182_v17, 0.0 }
  0x9f   :  { %233 = vadd.xlane.f32.xlu0 %v232_v16  ;;  %236 = vadd.xlane.f32.xlu1 %v235_v19 }
  0xa1   :  { %v186_v21 = vpop.permute.xlu1 %185  ;;  %v184_v22 = vpop.permute.xlu0 %183 }
  0xa2   :  { %v241_v23 = vsel %vm81_vm0, %v184_v22, 0.0  ;;  %v244_v24 = vsel %vm81_vm0, %v186_v21, 0.0 }
  0xa3   :  { %239 = vadd.xlane.f32.xlu0 %v238_v20  ;;  %242 = vadd.xlane.f32.xlu1 %v241_v23 }
  0xa5   :  { %v190_v25 = vpop.permute.xlu1 %189  ;;  %v188_v26 = vpop.permute.xlu0 %187 }
  0xa6   :  { %v247_v27 = vsel %vm81_vm0, %v188_v26, 0.0  ;;  %v250_v28 = vsel %vm81_vm0, %v190_v25, 0.0 }
  0xa7   :  { %245 = vadd.xlane.f32.xlu0 %v244_v24  ;;  %248 = vadd.xlane.f32.xlu1 %v247_v27 }
  0xa9   :  { %v194_v29 = vpop.permute.xlu1 %193  ;;  %v192_v30 = vpop.permute.xlu0 %191 }
  0xaa   :  { %v253_v31 = vsel %vm81_vm0, %v192_v30, 0.0  ;;  %v256_v32 = vsel %vm81_vm0, %v194_v29, 0.0 }
  0xab   :  { %251 = vadd.xlane.f32.xlu0 %v250_v28  ;;  %254 = vadd.xlane.f32.xlu1 %v253_v31 }
  0xaf   :  { %257 = vadd.xlane.f32.xlu0 %v256_v32 }
  0xe3   :  { %v84_v33 = vpop.xlane.xlu0 %83 }
  0xe4   :  { %131 = vst.msk [vmem:[#allocation5] sm:$0xff] %vm130_vm1, %v84_v33 }
  0xe7   :  { %v90_v34 = vpop.xlane.xlu0 %89 }
  0xe8   :  { %v87_v35 = vpop.xlane.xlu1 %86  ;;  %133 = vst.msk [vmem:[#allocation5 + $0x10] sm:$0xff] %vm130_vm1, %v90_v34 }
  0xe9   :  { %132 = vst.msk [vmem:[#allocation5 + $0x8] sm:$0xff] %vm130_vm1, %v87_v35 }
  0xeb   :  { %v93_v36 = vpop.xlane.xlu0 %92 }
  0xec   :  { %v96_v37 = vpop.xlane.xlu1 %95  ;;  %134 = vst.msk [vmem:[#allocation5 + $0x18] sm:$0xff] %vm130_vm1, %v93_v36 }
  0xed   :  { %135 = vst.msk [vmem:[#allocation5 + $0x20] sm:$0xff] %vm130_vm1, %v96_v37 }
  0xef   :  { %v99_v38 = vpop.xlane.xlu0 %98 }
  0xf0   :  { %v102_v39 = vpop.xlane.xlu1 %101  ;;  %136 = vst.msk [vmem:[#allocation5 + $0x28] sm:$0xff] %vm130_vm1, %v99_v38 }
  0xf1   :  { %137 = vst.msk [vmem:[#allocation5 + $0x30] sm:$0xff] %vm130_vm1, %v102_v39 }
  0xf3   :  { %v105_v40 = vpop.xlane.xlu0 %104 }
  0xf4   :  { %v108_v41 = vpop.xlane.xlu1 %107  ;;  %138 = vst.msk [vmem:[#allocation5 + $0x38] sm:$0xff] %vm130_vm1, %v105_v40 }
  0xf5   :  { %139 = vst.msk [vmem:[#allocation5 + $0x40] sm:$0xff] %vm130_vm1, %v108_v41 }
  0xf7   :  { %v111_v42 = vpop.xlane.xlu0 %110 }
  0xf8   :  { %v114_v43 = vpop.xlane.xlu1 %113  ;;  %140 = vst.msk [vmem:[#allocation5 + $0x48] sm:$0xff] %vm130_vm1, %v111_v42 }
  0xf9   :  { %141 = vst.msk [vmem:[#allocation5 + $0x50] sm:$0xff] %vm130_vm1, %v114_v43 }
  0xfb   :  { %v117_v44 = vpop.xlane.xlu0 %116 }
  0xfc   :  { %v120_v45 = vpop.xlane.xlu1 %119  ;;  %142 = vst.msk [vmem:[#allocation5 + $0x58] sm:$0xff] %vm130_vm1, %v117_v44 }
  0xfd   :  { %143 = vst.msk [vmem:[#allocation5 + $0x60] sm:$0xff] %vm130_vm1, %v120_v45 }
  0xff   :  { %v123_v46 = vpop.xlane.xlu0 %122 }
 0x100   :  { %v126_v47 = vpop.xlane.xlu1 %125  ;;  %144 = vst.msk [vmem:[#allocation5 + $0x68] sm:$0xff] %vm130_vm1, %v123_v46 }
 0x101   :  { %145 = vst.msk [vmem:[#allocation5 + $0x70] sm:$0xff] %vm130_vm1, %v126_v47 }
 0x103   :  { %v129_v48 = vpop.xlane.xlu0 %128 }
 0x104   :  { %146 = vst.msk [vmem:[#allocation5 + $0x78] sm:$0xff] %vm130_vm1, %v129_v48 }
 0x11c   :  { %v213_v49 = vpop.xlane.xlu1 %212 }
 0x11d   :  { %260 = vst.msk [vmem:[#allocation5] sm:$0xff] %vm259_vm2, %v213_v49 }
 0x120   :  { %v219_v50 = vpop.xlane.xlu1 %218  ;;  %v216_v51 = vpop.xlane.xlu0 %215 }
 0x121   :  { %262 = vst.msk [vmem:[#allocation5 + $0x10] sm:$0xff] %vm259_vm2, %v219_v50  ;;  %261 = vst.msk [vmem:[#allocation5 + $0x8] sm:$0xff] %vm259_vm2, %v216_v51 }
 0x124   :  { %v222_v52 = vpop.xlane.xlu0 %221  ;;  %v225_v53 = vpop.xlane.xlu1 %224 }
 0x125   :  { %263 = vst.msk [vmem:[#allocation5 + $0x18] sm:$0xff] %vm259_vm2, %v222_v52  ;;  %264 = vst.msk [vmem:[#allocation5 + $0x20] sm:$0xff] %vm259_vm2, %v225_v53 }
 0x128   :  { %v228_v54 = vpop.xlane.xlu0 %227  ;;  %v231_v55 = vpop.xlane.xlu1 %230 }
 0x129   :  { %265 = vst.msk [vmem:[#allocation5 + $0x28] sm:$0xff] %vm259_vm2, %v228_v54  ;;  %266 = vst.msk [vmem:[#allocation5 + $0x30] sm:$0xff] %vm259_vm2, %v231_v55 }
 0x12c   :  { %v234_v56 = vpop.xlane.xlu0 %233  ;;  %v237_v57 = vpop.xlane.xlu1 %236 }
 0x12d   :  { %267 = vst.msk [vmem:[#allocation5 + $0x38] sm:$0xff] %vm259_vm2, %v234_v56  ;;  %268 = vst.msk [vmem:[#allocation5 + $0x40] sm:$0xff] %vm259_vm2, %v237_v57 }
 0x130   :  { %v240_v58 = vpop.xlane.xlu0 %239  ;;  %v243_v59 = vpop.xlane.xlu1 %242 }
 0x131   :  { %269 = vst.msk [vmem:[#allocation5 + $0x48] sm:$0xff] %vm259_vm2, %v240_v58  ;;  %270 = vst.msk [vmem:[#allocation5 + $0x50] sm:$0xff] %vm259_vm2, %v243_v59 }
 0x134   :  { %v246_v60 = vpop.xlane.xlu0 %245  ;;  %v249_v61 = vpop.xlane.xlu1 %248 }
 0x135   :  { %271 = vst.msk [vmem:[#allocation5 + $0x58] sm:$0xff] %vm259_vm2, %v246_v60  ;;  %272 = vst.msk [vmem:[#allocation5 + $0x60] sm:$0xff] %vm259_vm2, %v249_v61 }
 0x138   :  { %v252_v62 = vpop.xlane.xlu0 %251  ;;  %v255_v63 = vpop.xlane.xlu1 %254 }
 0x139   :  { %273 = vst.msk [vmem:[#allocation5 + $0x68] sm:$0xff] %vm259_vm2, %v252_v62  ;;  %274 = vst.msk [vmem:[#allocation5 + $0x70] sm:$0xff] %vm259_vm2, %v255_v63 }
 0x13c   :  { %v258_v0 = vpop.xlane.xlu0 %257 }
 0x13d   :  { %275 = vst.msk [vmem:[#allocation5 + $0x78] sm:$0xff] %vm259_vm2, %v258_v0 }
 0x13e   :  { %280 = vsyncadd [#allocation4], 2032  ;;  %s351_s1 = smov [#allocation5]  }
 0x13f   :  { %s281_s26 = sshll.u32 %s351_s1, 4  ;;  %s282_s26 = int_to_ptr.vmem [resolvable:$true] %s281_s26 }
 0x140   :  { %s321_s27 = scalar_lea.vmem %s282_s26, 16  ;;  %s325_s28 = scalar_lea.vmem %s282_s26, 2048 }
 0x141   :  { %p322_p8 = scmp.ne.s32.totalorder %s282_s26, %s321_s27  ;;  %p326_p9 = scmp.lt.s32.totalorder %s282_s26, %s282_s26 }
 0x142   :  { %p327_p10 = scmp.lt.s32.totalorder %s325_s28, %s321_s27 }
 0x144   :  { %p328_p11 = por %p327_p10, %p326_p9 }
 0x146   :  { %p329_p12 = pnand %p328_p11, %p322_p8 }
 0x148   :  { %332 = shalt.err (!%p329_p12)
}
 0x149   :  { %s333_s3 = scalar_lea.hbm %s482_s2, 16 }
 0x14a   :  { %p334_p13 = scmp.ne.s32.totalorder %s482_s2, %s333_s3  ;;  %p337_p0 = scmp.lt.u32.totalorder %s333_s3, %s482_s2 }
 0x14c   :  { %p339_p1 = pnand %p337_p0, %p334_p13 }
 0x14e   :  { %342 = shalt.err (!%p339_p1)
}
 0x14f   :  { %287 = dma.vmem_to_hbm [thread:$0]  %s282_s26, 16, %s482_s2, [#allocation4], %s348_s20, %s348_s20, %s349_s21  }
 0x150   :  { %345 = dma.done.wait [#allocation4], 2048  }
 0x151   :  { %346 = vsyncadd [#allocation4], 4294965248 }
 0x152   :  { %291 = vsyncpa [#allocation3], 1 }
 0x153   :  { %292 = vsyncpa [#allocation4], 1 }

</bundles_post_ra>
